<compile_context>
chip_gen: v5e
topology: v5e:2x2
jax: 0.10.0
libtpu: 0.0.40
codegen_flags: <defaults>
</compile_context>

<pallas_src>
import functools

import jax
import jax.numpy as jnp
from jax.experimental import pallas as pl
from jax.experimental.pallas import tpu as pltpu


def _round_up(x, m):
    return (x + m - 1) // m * m


def _swl_kernel(x_cur_ref, x_halo_ref, w_ref, b_ref, o_ref, win_ref, *,
                window_size, compute_dtype):
    """One (batch-block, seq-tile) step.

    x_cur_ref : (Bblk, TS, E)        current sequence tile
    x_halo_ref: (Bblk, TH, E)        last TH rows of the previous seq tile
    w_ref     : (W*E, O_pad)         weight with K layout k = w*E + e
    b_ref     : (1, O_pad)           bias (f32)
    o_ref     : (Bblk, TS, O_pad)    output tile (lane-dense)
    win_ref   : (Bblk, LEFT+TS, E)   VMEM scratch: causally padded window
    """
    W = window_size
    Bblk, TS, E = x_cur_ref.shape
    TH = x_halo_ref.shape[1]
    left = win_ref.shape[1] - TS
    ti = pl.program_id(1)

    # ---- build the zero/halo-padded window in VMEM (sublane-aligned stores) --
    if W > 1:
        if TH >= W - 1:
            halo = x_halo_ref[...].astype(compute_dtype)
            # first sequence tile: the causal pad is zeros, not the fetched rows
            halo = jnp.where(ti == 0, jnp.zeros_like(halo), halo)
            win_ref[:, :TH, :] = halo                  # left == TH in this case
        else:
            # sequence shorter than the window: single tile, pad is all zeros
            win_ref[:, :left, :] = jnp.zeros((Bblk, left, E), compute_dtype)
    win_ref[:, left:, :] = x_cur_ref[...].astype(compute_dtype)

    # ---- im2col fused into the matmul K dimension ----------------------------
    # slab[b, t, w*E + e] = padded_window[b, t + w, e]
    base = left - (W - 1)
    pieces = [win_ref[:, base + w: base + w + TS, :] for w in range(W)]
    slab = pieces[0] if W == 1 else jnp.concatenate(pieces, axis=-1)  # (Bblk, TS, W*E)
    slab2d = slab.reshape(Bblk * TS, W * E)

    acc = jnp.dot(slab2d, w_ref[...], preferred_element_type=jnp.float32)
    out = acc + b_ref[...].astype(jnp.float32)          # (Bblk*TS, O_pad), f32
    o_ref[...] = out.reshape(Bblk, TS, o_ref.shape[-1]).astype(o_ref.dtype)


def sliding_window_linear(x, weight, bias, window_size, *,
                          seq_tile=512, target_m=256,
                          compute_dtype=jnp.bfloat16):
    """Pallas TPU forward of SlidingWindowLinear.

    x:      (B, S, E)
    weight: (O, E * window_size)   -- torch nn.Linear layout
    bias:   (O,)
    returns (B, S, O)
    """
    B, S, E = x.shape
    W = int(window_size)
    O = weight.shape[0]
    assert weight.shape == (O, E * W) and bias.shape == (O,)

    # ---- lane-dense output: pad the O (lane) axis up to a multiple of 128 ----
    O_pad = _round_up(O, 128)

    # weight[o, e*W + w] -> w_k[w*E + e, o]  (matches the in-kernel im2col)
    w_k = jnp.transpose(weight.reshape(O, E, W), (2, 1, 0)).reshape(W * E, O)
    w_k = jnp.pad(w_k, ((0, 0), (0, O_pad - O))).astype(compute_dtype)
    b_p = jnp.pad(bias, (0, O_pad - O)).reshape(1, O_pad).astype(jnp.float32)

    # ---- tiling ---------------------------------------------------------------
    # Halo block = last TH rows of the previous seq tile; TH is a sublane-aligned
    # cover of the W-1 causal rows, so the halo re-read is only TH/TS of x.
    th = min(max(8, _round_up(W - 1, 8)), S)

    if S <= seq_tile:
        ts = S                                    # one tile covers the sequence
    else:
        ts = max(th, (seq_tile // th) * th)       # multiple of th -> halo indexing

    xi = x.dtype.itemsize
    ci = jnp.dtype(compute_dtype).itemsize
    oi = x.dtype.itemsize
    left = max(th, W - 1) if W > 1 else 0

    def _vmem_estimate(ts_, bblk_):
        return (2 * bblk_ * ts_ * E * xi           # current tile (double buffered)
                + 2 * bblk_ * th * E * xi          # halo block
                + 2 * W * E * O_pad * ci           # weight (stays resident)
                + 2 * O_pad * 4                    # bias
                + 2 * bblk_ * ts_ * O_pad * oi     # output tile
                + bblk_ * (left + ts_) * E * ci    # window scratch
                + bblk_ * ts_ * W * E * ci         # im2col slab (live value)
                + bblk_ * ts_ * O_pad * 4)         # f32 matmul result

    # Shrink the seq tile until the per-step footprint fits every generation's
    # scoped VMEM (v7x has only 64 MiB physical).
    vmem_budget = 20 << 20
    while S > ts and ts > th and _vmem_estimate(ts, 1) > vmem_budget:
        new_ts = ((ts // 2) // th) * th
        if new_ts < th:
            break
        ts = new_ts
    num_t = -(-S // ts)

    # Pack several batch rows per step so the MXU M dimension reaches target_m.
    if ts % 8 == 0:
        bblk = min(B, max(1, target_m // ts))
    else:
        bblk = 1
    while B % bblk:
        bblk -= 1
    while bblk > 1 and _vmem_estimate(ts, bblk) > vmem_budget:
        bblk -= 1
        while B % bblk:
            bblk -= 1
    num_b = B // bblk

    tph = ts // th                    # halo fine-blocks per sequence tile
    est = _vmem_estimate(ts, bblk)
    vmem_limit = int(min(max(est + est // 2 + (8 << 20), 32 << 20), 46 << 20))

    kernel = functools.partial(_swl_kernel, window_size=W,
                               compute_dtype=compute_dtype)

    out_padded = pl.pallas_call(
        kernel,
        out_shape=jax.ShapeDtypeStruct((B, S, O_pad), x.dtype),
        grid_spec=pltpu.PrefetchScalarGridSpec(
            num_scalar_prefetch=0,
            grid=(num_b, num_t),
            in_specs=[
                # current sequence tile
                pl.BlockSpec((bblk, ts, E), lambda bi, ti: (bi, ti, 0)),
                # last th rows of the previous tile (fine blocking of the same x)
                pl.BlockSpec((bblk, th, E),
                             lambda bi, ti: (bi, jnp.maximum(ti * tph - 1, 0), 0)),
                # weight / bias: constant block index -> stays VMEM-resident
                pl.BlockSpec((W * E, O_pad), lambda bi, ti: (0, 0)),
                pl.BlockSpec((1, O_pad), lambda bi, ti: (0, 0)),
            ],
            out_specs=pl.BlockSpec((bblk, ts, O_pad), lambda bi, ti: (bi, ti, 0)),
            scratch_shapes=[pltpu.VMEM((bblk, left + ts, E), compute_dtype)],
        ),
        compiler_params=pltpu.CompilerParams(
            dimension_semantics=("parallel", "parallel"),
            vmem_limit_bytes=vmem_limit),
        cost_estimate=pl.CostEstimate(
            flops=2 * B * S * W * E * O_pad,
            transcendentals=0,
            bytes_accessed=(x.nbytes + B * num_t * th * E * xi
                            + w_k.size * ci + b_p.size * 4
                            + B * S * O_pad * oi)),
    )(x, x, w_k, b_p)

    if O_pad != O:
        out_padded = out_padded[..., :O]
    return out_padded


def _reference(x, weight, bias, window_size):
    """Pure-JAX reference mirroring the PyTorch forward exactly."""
    B, S, E = x.shape
    W = window_size
    padded = jnp.pad(x, ((0, 0), (W - 1, 0), (0, 0)))
    windows = jnp.stack([padded[:, w:w + S, :] for w in range(W)], axis=-1)
    windows = windows.reshape(B, S, E * W)
    return windows @ weight.T + bias


if __name__ == "__main__":
    # Module config (input_dim=emb, output_dim, window_size)
    batch, seq_len, emb_dim = 2, 8, 32
    output_dim, window_size = 16, 4

    key = jax.random.PRNGKey(0)
    kx, kw, kb, kx2 = jax.random.split(key, 4)

    # nn.Linear(E*W, O) init (uniform +/- 1/sqrt(fan_in)) then scaled by 1e-4,
    # as in the module's __init__.
    fan_in = emb_dim * window_size
    bound = 1.0 / jnp.sqrt(fan_in)
    weight = jax.random.uniform(kw, (output_dim, fan_in),
                                minval=-bound, maxval=bound,
                                dtype=jnp.float32) * 1e-4
    bias = jax.random.uniform(kb, (output_dim,),
                              minval=-bound, maxval=bound,
                              dtype=jnp.float32) * 1e-4

    # --- test 1: module-sized input, f32 MXU path (tight check) --------------
    x = jax.random.normal(kx, (batch, seq_len, emb_dim), dtype=jnp.float32)
    out_f32 = jax.block_until_ready(
        sliding_window_linear(x, weight, bias, window_size,
                              compute_dtype=jnp.float32))
    ref = _reference(x, weight, bias, window_size)
    assert out_f32.shape == (batch, seq_len, output_dim)
    assert jnp.allclose(out_f32, ref, atol=2e-6, rtol=1e-3), "f32 mismatch"

    # --- test 2: same input, bf16 MXU path (default, looser tolerance) -------
    out_bf16 = jax.block_until_ready(
        sliding_window_linear(x, weight, bias, window_size))
    assert out_bf16.shape == (batch, seq_len, output_dim)
    assert jnp.allclose(out_bf16, ref, atol=2e-5, rtol=5e-2), "bf16 mismatch"

    # --- test 3: longer sequence so the seq tiling + halo path is exercised --
    seq_long = 64
    x2 = jax.random.normal(kx2, (batch, seq_long, emb_dim), dtype=jnp.float32)
    out_long = jax.block_until_ready(
        sliding_window_linear(x2, weight, bias, window_size,
                              seq_tile=16, compute_dtype=jnp.float32))
    ref_long = _reference(x2, weight, bias, window_size)
    assert out_long.shape == (batch, seq_long, output_dim)
    assert jnp.allclose(out_long, ref_long, atol=2e-6, rtol=1e-3), "tiled mismatch"

    print("KERNEL_OK")
</pallas_src>

<mosaic_0001>
module attributes {stable_mosaic.version = 11 : i64} {
  func.func @_swl_kernel(%arg0: i32, %arg1: i32, %arg2: memref<2x8x32xf32, #tpu.memory_space<vmem>>, %arg3: memref<2x8x32xf32, #tpu.memory_space<vmem>>, %arg4: memref<128x128xf32, #tpu.memory_space<vmem>>, %arg5: memref<1x128xf32, #tpu.memory_space<vmem>>, %arg6: memref<2x8x128xf32, #tpu.memory_space<vmem>>, %arg7: memref<2x16x32xf32, #tpu.memory_space<vmem>>) attributes {dimension_semantics = [#tpu.dimension_semantics<parallel>, #tpu.dimension_semantics<parallel>], iteration_bounds = array<i64: 1, 1>, scalar_prefetch = 0 : i64, scratch_operands = 1 : i64, tpu.core_type = #tpu.core_type<tc>, window_params = [{transform_indices = @transform_0, window_bounds = array<i64: 2, 8, 32>}, {transform_indices = @transform_1, window_bounds = array<i64: 2, 8, 32>}, {pipeline_mode = #tpu.pipeline_mode<synchronous>, transform_indices = @transform_2, window_bounds = array<i64: 128, 128>}, {pipeline_mode = #tpu.pipeline_mode<synchronous>, transform_indices = @transform_3, window_bounds = array<i64: 1, 128>}, {transform_indices = @transform_4, window_bounds = array<i64: 2, 8, 128>}]} {
    %c0 = arith.constant 0 : index
    %c0_0 = arith.constant 0 : index
    %c0_1 = arith.constant 0 : index
    %0 = vector.load %arg3[%c0, %c0_0, %c0_1] : memref<2x8x32xf32, #tpu.memory_space<vmem>>, vector<2x8x32xf32>
    %c0_i32 = arith.constant 0 : i32
    %1 = arith.cmpi eq, %arg1, %c0_i32 : i32
    %cst = arith.constant 0.000000e+00 : f32
    %2 = vector.broadcast %cst : f32 to vector<2x8x32xf32>
    %3 = arith.select %1, %2, %0 : vector<2x8x32xf32>
    %c0_2 = arith.constant 0 : index
    %c0_3 = arith.constant 0 : index
    %c0_4 = arith.constant 0 : index
    %4 = vector.load %arg7[%c0_2, %c0_3, %c0_4] : memref<2x16x32xf32, #tpu.memory_space<vmem>>, vector<2x8x32xf32>
    tpu.vector_store %arg7[%c0_2, %c0_3, %c0_4], %3 {strides = array<i32>} : memref<2x16x32xf32, #tpu.memory_space<vmem>>, vector<2x8x32xf32>,
    %c0_5 = arith.constant 0 : index
    %c0_6 = arith.constant 0 : index
    %c0_7 = arith.constant 0 : index
    %5 = vector.load %arg2[%c0_5, %c0_6, %c0_7] : memref<2x8x32xf32, #tpu.memory_space<vmem>>, vector<2x8x32xf32>
    %c0_8 = arith.constant 0 : index
    %c8 = arith.constant 8 : index
    %c0_9 = arith.constant 0 : index
    %6 = vector.load %arg7[%c0_8, %c8, %c0_9] : memref<2x16x32xf32, #tpu.memory_space<vmem>>, vector<2x8x32xf32>
    tpu.vector_store %arg7[%c0_8, %c8, %c0_9], %5 {strides = array<i32>} : memref<2x16x32xf32, #tpu.memory_space<vmem>>, vector<2x8x32xf32>,
    %c0_10 = arith.constant 0 : index
    %c5 = arith.constant 5 : index
    %c0_11 = arith.constant 0 : index
    %7 = vector.load %arg7[%c0_10, %c5, %c0_11] : memref<2x16x32xf32, #tpu.memory_space<vmem>>, vector<2x8x32xf32>
    %c0_12 = arith.constant 0 : index
    %c6 = arith.constant 6 : index
    %c0_13 = arith.constant 0 : index
    %8 = vector.load %arg7[%c0_12, %c6, %c0_13] : memref<2x16x32xf32, #tpu.memory_space<vmem>>, vector<2x8x32xf32>
    %c0_14 = arith.constant 0 : index
    %c7 = arith.constant 7 : index
    %c0_15 = arith.constant 0 : index
    %9 = vector.load %arg7[%c0_14, %c7, %c0_15] : memref<2x16x32xf32, #tpu.memory_space<vmem>>, vector<2x8x32xf32>
    %c0_16 = arith.constant 0 : index
    %c8_17 = arith.constant 8 : index
    %c0_18 = arith.constant 0 : index
    %10 = vector.load %arg7[%c0_16, %c8_17, %c0_18] : memref<2x16x32xf32, #tpu.memory_space<vmem>>, vector<2x8x32xf32>
    %11 = tpu.concatenate %7, %8, %9, %10 in 2 : vector<2x8x32xf32>, vector<2x8x32xf32>, vector<2x8x32xf32>, vector<2x8x32xf32> -> vector<2x8x128xf32>
    %12 = vector.shape_cast %11 : vector<2x8x128xf32> to vector<16x128xf32>
    %c0_19 = arith.constant 0 : index
    %c0_20 = arith.constant 0 : index
    %13 = vector.load %arg4[%c0_19, %c0_20] : memref<128x128xf32, #tpu.memory_space<vmem>>, vector<128x128xf32>
    %cst_21 = arith.constant dense<0.000000e+00> : vector<16x128xf32>
    %14 = tpu.matmul %12, %13, %cst_21 {dimension_numbers = #tpu.dot_dimension_numbers<[1], [0], [0], [1], [0, 0, 1, 1], [], []>} : vector<16x128xf32>, vector<128x128xf32>, vector<16x128xf32> -> vector<16x128xf32>
    %c0_22 = arith.constant 0 : index
    %c0_23 = arith.constant 0 : index
    %15 = vector.load %arg5[%c0_22, %c0_23] : memref<1x128xf32, #tpu.memory_space<vmem>>, vector<1x128xf32>
    %16 = vector.broadcast %15 : vector<1x128xf32> to vector<16x128xf32>
    %17 = arith.addf %14, %16 : vector<16x128xf32>
    %18 = vector.shape_cast %17 : vector<16x128xf32> to vector<2x8x128xf32>
    %c0_24 = arith.constant 0 : index
    %c0_25 = arith.constant 0 : index
    %c0_26 = arith.constant 0 : index
    %19 = vector.load %arg6[%c0_24, %c0_25, %c0_26] : memref<2x8x128xf32, #tpu.memory_space<vmem>>, vector<2x8x128xf32>
    tpu.vector_store %arg6[%c0_24, %c0_25, %c0_26], %18 {strides = array<i32>} : memref<2x8x128xf32, #tpu.memory_space<vmem>>, vector<2x8x128xf32>,
    return
  }
  func.func @transform_0(%arg0: i32, %arg1: i32) -> (i32, i32, i32) {
    %c0_i32 = arith.constant 0 : i32
    %c0_i32_0 = arith.constant 0 : i32
    return %arg0, %arg1, %c0_i32 : i32, i32, i32
  }
  func.func @transform_1(%arg0: i32, %arg1: i32) -> (i32, i32, i32) {
    %c1_i32 = arith.constant 1 : i32
    %0 = arith.muli %arg1, %c1_i32 : i32
    %c1_i32_0 = arith.constant 1 : i32
    %1 = arith.subi %0, %c1_i32_0 : i32
    %c0_i32 = arith.constant 0 : i32
    %2 = arith.maxsi %1, %c0_i32 : i32
    %c0_i32_1 = arith.constant 0 : i32
    %c0_i32_2 = arith.constant 0 : i32
    return %arg0, %2, %c0_i32_1 : i32, i32, i32
  }
  func.func @transform_2(%arg0: i32, %arg1: i32) -> (i32, i32) {
    %c0_i32 = arith.constant 0 : i32
    %c0_i32_0 = arith.constant 0 : i32
    %c0_i32_1 = arith.constant 0 : i32
    return %c0_i32, %c0_i32_0 : i32, i32
  }
  func.func @transform_3(%arg0: i32, %arg1: i32) -> (i32, i32) {
    %c0_i32 = arith.constant 0 : i32
    %c0_i32_0 = arith.constant 0 : i32
    %c0_i32_1 = arith.constant 0 : i32
    return %c0_i32, %c0_i32_0 : i32, i32
  }
  func.func @transform_4(%arg0: i32, %arg1: i32) -> (i32, i32, i32) {
    %c0_i32 = arith.constant 0 : i32
    %c0_i32_0 = arith.constant 0 : i32
    return %arg0, %arg1, %c0_i32 : i32, i32, i32
  }
}

</mosaic_0001>

<bundles_post_ra>
// kernel: tpu_custom_call.1
= control target key start
LH: loop header
LB: loop body
LE: loop exit
PB: predicated region body
PF: predicated region fallthrough
CT: control target
= control target key end

     0   :  { %9 = vsyncpa [#allocation4], 0  ;;  %s407_s0 = inlined_call_operand.hbm [shape: f32[2,8,32], index: 0, kind: input, shape index: {}]   ;;  %s408_s1 = inlined_call_operand.hbm [shape: f32[2,8,32], index: 1, kind: input, shape index: {}]   ;;  %s409_s2 = inlined_call_operand.hbm [shape: f32[128,128], index: 2, kind: input, shape index: {}]   ;;  %s410_s3 = inlined_call_operand.vmem [shape: f32[1,128], index: 3, kind: input, shape index: {}]   ;;  %s411_s4 = inlined_call_operand.hbm [shape: f32[2,8,128], index: 4, kind: output, shape index: {}]  }
   0x1   :  { %10 = vsyncpa [#allocation7], 0 }
   0x2   :  { %11 = vsyncpa [#allocation5], 0  ;;  %s34_s17 = sshll.u32 %s408_s1, 4  ;;  %s339_s18 = smov [#allocation6]   ;;  %s35_s17 = int_to_ptr.hbm [resolvable:$true] %s34_s17 }
   0x3   :  { %s36_s19 = sshll.u32 %s339_s18, 4  ;;  %s16_s22 = sshll.u32 %s407_s0, 4  ;;  %s37_s19 = int_to_ptr.vmem [resolvable:$true] %s36_s19  ;;  %s17_s22 = int_to_ptr.hbm [resolvable:$true] %s16_s22 }
   0x4   :  { %s340_s23 = smov 128   ;;  %s341_s24 = smov 8  }
   0x5   :  { %42 = dma.hbm_to_vmem [thread:$0]  %s35_s17, 256, %s37_s19, [#allocation7], %s340_s23, %s340_s23, %s341_s24  }
   0x6   :  { %s342_s25 = smov [#allocation3]   ;;  %s47_s1 = sshll.u32 %s409_s2, 4  ;;  %s48_s1 = int_to_ptr.hbm [resolvable:$true] %s47_s1 }
   0x7   :  { %s18_s26 = sshll.u32 %s342_s25, 4  ;;  %s343_s0 = smov [#allocation8]   ;;  %s19_s26 = int_to_ptr.vmem [resolvable:$true] %s18_s26 }
   0x8   :  { %24 = dma.hbm_to_vmem [thread:$0]  %s17_s22, 256, %s19_s26, [#allocation4], %s340_s23, %s340_s23, %s341_s24  }
   0x9   :  { %s49_s29 = sshll.u32 %s343_s0, 4  ;;  %s50_s29 = int_to_ptr.vmem [resolvable:$true] %s49_s29 }
   0xa   :  { %55 = dma.hbm_to_vmem [thread:$0]  %s48_s1, 2048, %s50_s29, [#allocation7], %s340_s23, %s340_s23, %s341_s24  }
   0xb   :  { %333 = dma.done.wait [#allocation4], 256  }
   0xc   :  { %334 = vsyncadd [#allocation4], 4294967040 }
   0xd   :  { %335 = dma.done.wait [#allocation7], 2304  }
   0xe   :  { %336 = vsyncadd [#allocation7], 4294964992  ;;  %vm81_vm0 = vcmask 261120   ;;  %v344_v0 = vmov 0.0   ;;  %v84_v1 = vld [vmem:[#allocation3] sm:$0xff]  ;;  %v85_v2 = vld [vmem:[#allocation3 + $0x8] sm:$0xff] }
   0xf   :  { %82 = vst.msk [vmem:[#allocation2] sm:$0xff] %vm81_vm0, %v344_v0  ;;  %v143_v3 = vld [vmem:[#allocation8 + $0x78] sm:$0xff]  ;;  %v142_v4 = vld [vmem:[#allocation8 + $0x70] sm:$0xff]  ;;  %v141_v5 = vld [vmem:[#allocation8 + $0x68] sm:$0xff]  ;;  %s345_s2 = smov 32   ;;  %s346_s30 = smov 96  }
  0x10   :  { %83 = vst.msk [vmem:[#allocation2 + $0x10] sm:$0xff] %vm81_vm0, %v344_v0  ;;  %148 = vmatpush.msra.mxu0 %v143_v3  ;;  %195 = vmatpush.msra.mxu1 %v143_v3  ;;  %v140_v6 = vld [vmem:[#allocation8 + $0x60] sm:$0xff]  ;;  %v139_v7 = vld [vmem:[#allocation8 + $0x58] sm:$0xff]  ;;  %v138_v10 = vld [vmem:[#allocation8 + $0x50] sm:$0xff]  ;;  %s347_s5 = smov 64   ;;  %vm122_vm1 = vcmask 523264  }
  0x11   :  { %86 = vst.msk [vmem:[#allocation2 + $0x8] sm:$0xff] %vm81_vm0, %v84_v1  ;;  %v137_v15 = vld [vmem:[#allocation8 + $0x48] sm:$0xff]  ;;  %v136_v16 = vld [vmem:[#allocation8 + $0x40] sm:$0xff]  ;;  %v135_v19 = vld [vmem:[#allocation8 + $0x38] sm:$0xff]  ;;  %vm125_vm2 = vcmask 785408   ;;  %s348_s8 = smov [#allocation9]  }
  0x12   :  { %87 = vst.msk [vmem:[#allocation2 + $0x18] sm:$0xff] %vm81_vm0, %v85_v2  ;;  %149 = vmatpush.msra.mxu0 %v142_v4  ;;  %196 = vmatpush.msra.mxu1 %v142_v4  ;;  %v134_v21 = vld [vmem:[#allocation8 + $0x30] sm:$0xff]  ;;  %v133_v22 = vld [vmem:[#allocation8 + $0x28] sm:$0xff]  ;;  %v132_v23 = vld [vmem:[#allocation8 + $0x20] sm:$0xff]  ;;  %s177_s9 = sshll.u32 %s348_s8, 4  ;;  %s179_s12 = sshll.u32 %s411_s4, 4  ;;  %s178_s9 = int_to_ptr.vmem [resolvable:$true] %s177_s9  ;;  %s180_s12 = int_to_ptr.hbm [resolvable:$true] %s179_s12 }
  0x13   :  { %v131_v24 = vld [vmem:[#allocation8 + $0x18] sm:$0xff]  ;;  %v130_v25 = vld [vmem:[#allocation8 + $0x10] sm:$0xff]  ;;  %v129_v26 = vld [vmem:[#allocation8 + $0x8] sm:$0xff] }
  0x14   :  { %150 = vmatpush.msra.mxu0 %v141_v5  ;;  %197 = vmatpush.msra.mxu1 %v141_v5  ;;  %v128_v27 = vld [vmem:[#allocation8] sm:$0xff] }
  0x15   :  { %v236_v45 = vld [vmem:[%s410_s3] ss:$0 sm:$0xff] }
  0x16   :  { %151 = vmatpush.msra.mxu0 %v140_v6  ;;  %198 = vmatpush.msra.mxu1 %v140_v6 }
  0x18   :  { %v90_v8 = vld [vmem:[#allocation2 + $0x6] sm:$0xff]  ;;  %152 = vmatpush.msra.mxu0 %v139_v7  ;;  %199 = vmatpush.msra.mxu1 %v139_v7 }
  0x19   :  { %v94_v9 = vld [vmem:[#allocation2 + $0x8] sm:$0xff]  ;;  %v91_v11 = vld [vmem:[#allocation2 + $0x16] sm:$0xff] }
  0x1a   :  { %v95_v12 = vld [vmem:[#allocation2 + $0x18] sm:$0xff]  ;;  %v221_v13 = vpack.i.bf16 %v91_v11, %v90_v8  ;;  %153 = vmatpush.msra.mxu0 %v138_v10  ;;  %200 = vmatpush.msra.mxu1 %v138_v10  ;;  %v92_v17 = vld [vmem:[#allocation2 + $0x7] sm:$0xff] }
  0x1b   :  { %v231_v14 = vpack.i.bf16 %v95_v12, %v94_v9  ;;  %v93_v18 = vld [vmem:[#allocation2 + $0x17] sm:$0xff]  ;;  %v88_v32 = vld [vmem:[#allocation2 + $0x5] sm:$0xff] }
  0x1c   :  { %222 = vrot.lane.b32.xlu0 %v221_v13, %s345_s2  ;;  %154 = vmatpush.msra.mxu0 %v137_v15  ;;  %v226_v20 = vpack.i.bf16 %v93_v18, %v92_v17  ;;  %v89_v33 = vld [vmem:[#allocation2 + $0x15] sm:$0xff] }
  0x1d   :  { %232 = vrot.lane.b32.xlu1 %v231_v14, %s346_s30  ;;  %201 = vmatpush.msra.mxu1 %v137_v15 }
  0x1e   :  { %155 = vmatpush.msra.mxu0 %v136_v16 }
  0x1f   :  { %202 = vmatpush.msra.mxu1 %v136_v16 }
  0x20   :  { %156 = vmatpush.msra.mxu0 %v135_v19 }
  0x21   :  { %203 = vmatpush.msra.mxu1 %v135_v19 }
  0x22   :  { %157 = vmatpush.msra.mxu0 %v134_v21 }
  0x23   :  { %204 = vmatpush.msra.mxu1 %v134_v21 }
  0x24   :  { %227 = vrot.lane.b32.xlu0 %v226_v20, %s347_s5  ;;  %158 = vmatpush.msra.mxu0 %v133_v22 }
  0x25   :  { %205 = vmatpush.msra.mxu1 %v133_v22 }
  0x26   :  { %159 = vmatpush.msra.mxu0 %v132_v23 }
  0x27   :  { %206 = vmatpush.msra.mxu1 %v132_v23 }
  0x28   :  { %160 = vmatpush.msra.mxu0 %v131_v24 }
  0x29   :  { %207 = vmatpush.msra.mxu1 %v131_v24 }
  0x2a   :  { %161 = vmatpush.msra.mxu0 %v130_v25 }
  0x2b   :  { %208 = vmatpush.msra.mxu1 %v130_v25 }
  0x2c   :  { %162 = vmatpush.msra.mxu0 %v129_v26 }
  0x2d   :  { %209 = vmatpush.msra.mxu1 %v129_v26 }
  0x2e   :  { %163 = vmatpush.msra.mxu0 %v128_v27 }
  0x2f   :  { %210 = vmatpush.msra.mxu1 %v128_v27 }
  0x8e   :  { %v223_v28 = vpop.permute.xlu0 %222 }
  0x8f   :  { %v233_v29 = vpop.permute.xlu1 %232  ;;  %v225_v30 = vunpack.i.h.bf16 %v223_v28  ;;  %v224_v31 = vunpack.i.l.bf16 %v223_v28 }
  0x90   :  { %v235_v35 = vunpack.i.h.bf16 %v233_v29  ;;  %v234_v36 = vunpack.i.l.bf16 %v233_v29 }
  0x91   :  { %v120_v39 = vsel %vm81_vm0, %v88_v32, %v224_v31  ;;  %v121_v40 = vsel %vm81_vm0, %v89_v33, %v225_v30 }
  0x96   :  { %v228_v34 = vpop.permute.xlu0 %227 }
  0x97   :  { %v230_v37 = vunpack.i.h.bf16 %v228_v34  ;;  %v229_v38 = vunpack.i.l.bf16 %v228_v34 }
  0x99   :  { %v123_v41 = vsel %vm122_vm1, %v120_v39, %v229_v38  ;;  %v124_v42 = vsel %vm122_vm1, %v121_v40, %v230_v37 }
  0x9a   :  { %v126_v43 = vsel %vm125_vm2, %v123_v41, %v234_v36  ;;  %v127_v44 = vsel %vm125_vm2, %v124_v42, %v235_v35 }
  0x9b   :  { %164 = vmatmul.f32.vlgmr.msra.gmra.mxu0 %v126_v43  ;;  %167 = vmatmul.f32.vlgmr.msra.gmra.mxu1 %v127_v44 }
 0x118   :  { %v165_v46 = vpop.f32.mrf.mxu0  ;;  %v168_v47 = vpop.f32.mrf.mxu1 }
 0x119   :  { %v166_v48 = vadd.f32 %v236_v45, %v165_v46  ;;  %v169_v49 = vadd.f32 %v236_v45, %v168_v47 }
 0x11b   :  { %171 = vst [vmem:[#allocation9] sm:$0xff] %v166_v48 }
 0x11c   :  { %172 = vst [vmem:[#allocation9 + $0x8] sm:$0xff] %v169_v49 }
 0x11d   :  { %185 = dma.vmem_to_hbm [thread:$0]  %s178_s9, 256, %s180_s12, [#allocation5], %s340_s23, %s340_s23, %s341_s24  }
 0x11e   :  { %337 = dma.done.wait [#allocation5], 256  }
 0x11f   :  { %338 = vsyncadd [#allocation5], 4294967040 }
 0x120   :  { %190 = vsyncpa [#allocation4], 1 }
 0x121   :  { %191 = vsyncpa [#allocation7], 1 }
 0x122   :  { %192 = vsyncpa [#allocation5], 1 }

</bundles_post_ra>
